<compile_context>
chip_gen: v6e
topology: v6e:2x2x1
jax: 0.10.0
libtpu: 0.0.40
codegen_flags: <defaults>
</compile_context>

<pallas_src>
import functools

import jax
import jax.numpy as jnp
from jax.experimental import pallas as pl
from jax.experimental.pallas import tpu as pltpu

_LANE = 128
_SUBLANE = 8


def _round_up(n, m):
    return (n + m - 1) // m * m


def _fused_kernel(ids_ref, table_ref, w1_ref, b1_ref, w2_ref, b2_ref,
                  w3_ref, b3_ref, out_ref, *, seq_len):
    block_b = ids_ref.shape[0]
    v_pad = table_ref.shape[0]

    # --- fused embedding gather + mean over T (no HBM intermediates) --------
    # counts[b, v] = (# of t with ids[b, t] == v) / T   =>
    # counts @ table == embedding(x).mean(dim=1) exactly, done on the MXU.
    ids = ids_ref[...]                                        # (block_b, T) i32
    iota_v = jax.lax.broadcasted_iota(jnp.int32, (block_b, v_pad), 1)
    counts = jnp.zeros((block_b, v_pad), jnp.float32)
    for t in range(seq_len):                                  # unrolled; T small
        counts += (iota_v == ids[:, t:t + 1]).astype(jnp.float32)
    counts = counts * (1.0 / seq_len)

    h = jnp.dot(counts, table_ref[...], preferred_element_type=jnp.float32)
    # fc_1 + relu
    h = jnp.dot(h, w1_ref[...], preferred_element_type=jnp.float32) + b1_ref[...]
    h = jnp.maximum(h, 0.0)
    # fc_2 + relu
    h = jnp.dot(h, w2_ref[...], preferred_element_type=jnp.float32) + b2_ref[...]
    h = jnp.maximum(h, 0.0)
    # fc_3 with output dim padded 1 -> 128: lane-dense unmasked store; only
    # column 0 is meaningful.
    out_ref[...] = (jnp.dot(h, w3_ref[...], preferred_element_type=jnp.float32)
                    + b3_ref[...])


def prepare_params(embedding_matrix, params):
    """One-time packing: transpose weights to (in, out) and zero-pad everything
    to 128-lane-aligned tiles.  Done OUTSIDE the per-call forward path."""
    w1, b1, w2, b2, w3, b3 = params
    V, E = embedding_matrix.shape
    H = w1.shape[0]
    v_pad = _round_up(V, _LANE)   # 50  -> 128
    e_pad = _round_up(E, _LANE)   # 300 -> 384
    h_pad = _round_up(H, _LANE)   # 150 -> 256
    n_pad = _LANE                 # fc3 out: 1 -> 128

    def pad2(a, rows, cols):
        return jnp.pad(a, ((0, rows - a.shape[0]), (0, cols - a.shape[1])))

    packed = {
        "table": pad2(embedding_matrix.astype(jnp.float32), v_pad, e_pad),
        "w1": pad2(w1.T, e_pad, h_pad),
        "b1": pad2(b1.reshape(1, -1), 1, h_pad),
        "w2": pad2(w2.T, h_pad, h_pad),
        "b2": pad2(b2.reshape(1, -1), 1, h_pad),
        "w3": pad2(w3.T, h_pad, n_pad),           # real weights in column 0
        "b3": pad2(b3.reshape(1, -1), 1, n_pad),  # real bias in column 0
    }
    dims = {"V": V, "E": E, "H": H,
            "v_pad": v_pad, "e_pad": e_pad, "h_pad": h_pad, "n_pad": n_pad}
    return packed, dims


def baseline_forward(x, length, packed, dims, *, block_b=128):
    """x: (B, T) int32 token ids; length: (B,) int32 (unused, as in reference)."""
    del length  # unused in the PyTorch forward as well
    B, T = x.shape
    v_pad, e_pad = dims["v_pad"], dims["e_pad"]
    h_pad, n_pad = dims["h_pad"], dims["n_pad"]

    # Shrink the batch tile for tiny B (no wasted padded-row compute); keep 128
    # for large B so the pipeline works in full tiles.
    block_b = min(block_b, _round_up(B, _SUBLANE))
    b_pad = _round_up(B, block_b)
    x_p = jnp.pad(x.astype(jnp.int32), ((0, b_pad - B), (0, 0)))

    grid = (b_pad // block_b,)
    const = lambda i: (0, 0)  # weights: same block every step -> VMEM-resident

    flops = 2 * b_pad * (v_pad * e_pad + e_pad * h_pad + h_pad * h_pad + h_pad * n_pad)
    bytes_accessed = 4 * (b_pad * T + v_pad * e_pad
                          + e_pad * h_pad + h_pad
                          + h_pad * h_pad + h_pad
                          + h_pad * n_pad + n_pad
                          + b_pad * n_pad)

    kernel = functools.partial(_fused_kernel, seq_len=T)

    out = pl.pallas_call(
        kernel,
        out_shape=jax.ShapeDtypeStruct((b_pad, n_pad), jnp.float32),
        grid_spec=pltpu.PrefetchScalarGridSpec(
            num_scalar_prefetch=0,
            grid=grid,
            in_specs=[
                pl.BlockSpec((block_b, T), lambda i: (i, 0)),  # token ids (batched)
                pl.BlockSpec((v_pad, e_pad), const),           # embedding table
                pl.BlockSpec((e_pad, h_pad), const),           # w1
                pl.BlockSpec((1, h_pad), const),               # b1
                pl.BlockSpec((h_pad, h_pad), const),           # w2
                pl.BlockSpec((1, h_pad), const),               # b2
                pl.BlockSpec((h_pad, n_pad), const),           # w3 (padded out dim)
                pl.BlockSpec((1, n_pad), const),               # b3
            ],
            out_specs=pl.BlockSpec((block_b, n_pad), lambda i: (i, 0)),
        ),
        compiler_params=pltpu.CompilerParams(
            dimension_semantics=("parallel",)),
        cost_estimate=pl.CostEstimate(
            flops=flops, transcendentals=0, bytes_accessed=bytes_accessed),
    )(x_p, packed["table"], packed["w1"], packed["b1"],
      packed["w2"], packed["b2"], packed["w3"], packed["b3"])

    # Column 0 holds fc_3's scalar output; drop batch padding.  h.flatten() -> (B,)
    return out[:B, 0]


def init_params(key, embedding_size=300, hidden=150):
    """Deterministic init mimicking nn.Linear default (uniform +/- 1/sqrt(fan_in))."""
    ks = jax.random.split(key, 6)

    def lin(kw, kb, fan_in, fan_out):
        bound = 1.0 / jnp.sqrt(fan_in)
        w = jax.random.uniform(kw, (fan_out, fan_in), jnp.float32, -bound, bound)
        b = jax.random.uniform(kb, (fan_out,), jnp.float32, -bound, bound)
        return w, b

    w1, b1 = lin(ks[0], ks[1], embedding_size, hidden)
    w2, b2 = lin(ks[2], ks[3], hidden, hidden)
    w3, b3 = lin(ks[4], ks[5], hidden, 1)
    return (w1, b1, w2, b2, w3, b3)


if __name__ == "__main__":
    key = jax.random.PRNGKey(0)
    k_emb, k_par, k_x, k_len = jax.random.split(key, 4)

    B, T, V, E, H = 8, 8, 50, 300, 150

    embedding_matrix = jax.random.normal(k_emb, (V, E), jnp.float32)
    params = init_params(k_par, embedding_size=E, hidden=H)
    packed, dims = prepare_params(embedding_matrix, params)

    x = jax.random.randint(k_x, (B, T), 0, V, dtype=jnp.int32)
    length = jax.random.randint(k_len, (B,), 1, T + 1, dtype=jnp.int32)

    out = baseline_forward(x, length, packed, dims)
    out = jax.block_until_ready(out)

    # Pure-JAX reference mirroring the PyTorch forward exactly.
    w1, b1, w2, b2, w3, b3 = params
    h = jnp.take(embedding_matrix, x, axis=0).mean(axis=1)
    h = jnp.maximum(h @ w1.T + b1, 0.0)
    h = jnp.maximum(h @ w2.T + b2, 0.0)
    ref = (h @ w3.T + b3).reshape(-1)

    assert out.shape == (B,)
    # Tolerance accounts for MXU default-precision f32 matmuls vs. the exact
    # gather+mean path in the reference.
    assert jnp.allclose(out, ref, atol=5e-3, rtol=5e-3), (out, ref)

    print("KERNEL_OK")
</pallas_src>

<mosaic_0001>
module attributes {stable_mosaic.version = 11 : i64} {
  func.func @_fused_kernel(%arg0: i32, %arg1: memref<8x8xi32, #tpu.memory_space<vmem>>, %arg2: memref<128x384xf32, #tpu.memory_space<vmem>>, %arg3: memref<384x256xf32, #tpu.memory_space<vmem>>, %arg4: memref<1x256xf32, #tpu.memory_space<vmem>>, %arg5: memref<256x256xf32, #tpu.memory_space<vmem>>, %arg6: memref<1x256xf32, #tpu.memory_space<vmem>>, %arg7: memref<256x128xf32, #tpu.memory_space<vmem>>, %arg8: memref<1x128xf32, #tpu.memory_space<vmem>>, %arg9: memref<8x128xf32, #tpu.memory_space<vmem>>) attributes {dimension_semantics = [#tpu.dimension_semantics<parallel>], iteration_bounds = array<i64: 1>, scalar_prefetch = 0 : i64, scratch_operands = 0 : i64, tpu.core_type = #tpu.core_type<tc>, window_params = [{transform_indices = @transform_0, window_bounds = array<i64: 8, 8>}, {pipeline_mode = #tpu.pipeline_mode<synchronous>, transform_indices = @transform_1, window_bounds = array<i64: 128, 384>}, {pipeline_mode = #tpu.pipeline_mode<synchronous>, transform_indices = @transform_2, window_bounds = array<i64: 384, 256>}, {pipeline_mode = #tpu.pipeline_mode<synchronous>, transform_indices = @transform_3, window_bounds = array<i64: 1, 256>}, {pipeline_mode = #tpu.pipeline_mode<synchronous>, transform_indices = @transform_4, window_bounds = array<i64: 256, 256>}, {pipeline_mode = #tpu.pipeline_mode<synchronous>, transform_indices = @transform_5, window_bounds = array<i64: 1, 256>}, {pipeline_mode = #tpu.pipeline_mode<synchronous>, transform_indices = @transform_6, window_bounds = array<i64: 256, 128>}, {pipeline_mode = #tpu.pipeline_mode<synchronous>, transform_indices = @transform_7, window_bounds = array<i64: 1, 128>}, {transform_indices = @transform_8, window_bounds = array<i64: 8, 128>}]} {
    %c0 = arith.constant 0 : index
    %c0_0 = arith.constant 0 : index
    %0 = vector.load %arg1[%c0, %c0_0] : memref<8x8xi32, #tpu.memory_space<vmem>>, vector<8x8xi32>
    %1 = tpu.iota {dimensions = array<i32: 1>} : vector<8x128xi32>
    %cst = arith.constant 0.000000e+00 : f32
    %2 = vector.broadcast %cst : f32 to vector<8x128xf32>
    %3 = vector.extract_strided_slice %0 {offsets = [0, 0], sizes = [8, 1], strides = [1, 1]} : vector<8x8xi32> to vector<8x1xi32>
    %4 = vector.broadcast %3 : vector<8x1xi32> to vector<8x128xi32>
    %5 = arith.cmpi eq, %1, %4 : vector<8x128xi32>
    %6 = arith.extui %5 : vector<8x128xi1> to vector<8x128xi32>
    %7 = arith.sitofp %6 : vector<8x128xi32> to vector<8x128xf32>
    %8 = arith.addf %2, %7 : vector<8x128xf32>
    %9 = vector.extract_strided_slice %0 {offsets = [0, 1], sizes = [8, 1], strides = [1, 1]} : vector<8x8xi32> to vector<8x1xi32>
    %10 = vector.broadcast %9 : vector<8x1xi32> to vector<8x128xi32>
    %11 = arith.cmpi eq, %1, %10 : vector<8x128xi32>
    %12 = arith.extui %11 : vector<8x128xi1> to vector<8x128xi32>
    %13 = arith.sitofp %12 : vector<8x128xi32> to vector<8x128xf32>
    %14 = arith.addf %8, %13 : vector<8x128xf32>
    %15 = vector.extract_strided_slice %0 {offsets = [0, 2], sizes = [8, 1], strides = [1, 1]} : vector<8x8xi32> to vector<8x1xi32>
    %16 = vector.broadcast %15 : vector<8x1xi32> to vector<8x128xi32>
    %17 = arith.cmpi eq, %1, %16 : vector<8x128xi32>
    %18 = arith.extui %17 : vector<8x128xi1> to vector<8x128xi32>
    %19 = arith.sitofp %18 : vector<8x128xi32> to vector<8x128xf32>
    %20 = arith.addf %14, %19 : vector<8x128xf32>
    %21 = vector.extract_strided_slice %0 {offsets = [0, 3], sizes = [8, 1], strides = [1, 1]} : vector<8x8xi32> to vector<8x1xi32>
    %22 = vector.broadcast %21 : vector<8x1xi32> to vector<8x128xi32>
    %23 = arith.cmpi eq, %1, %22 : vector<8x128xi32>
    %24 = arith.extui %23 : vector<8x128xi1> to vector<8x128xi32>
    %25 = arith.sitofp %24 : vector<8x128xi32> to vector<8x128xf32>
    %26 = arith.addf %20, %25 : vector<8x128xf32>
    %27 = vector.extract_strided_slice %0 {offsets = [0, 4], sizes = [8, 1], strides = [1, 1]} : vector<8x8xi32> to vector<8x1xi32>
    %28 = vector.broadcast %27 : vector<8x1xi32> to vector<8x128xi32>
    %29 = arith.cmpi eq, %1, %28 : vector<8x128xi32>
    %30 = arith.extui %29 : vector<8x128xi1> to vector<8x128xi32>
    %31 = arith.sitofp %30 : vector<8x128xi32> to vector<8x128xf32>
    %32 = arith.addf %26, %31 : vector<8x128xf32>
    %33 = vector.extract_strided_slice %0 {offsets = [0, 5], sizes = [8, 1], strides = [1, 1]} : vector<8x8xi32> to vector<8x1xi32>
    %34 = vector.broadcast %33 : vector<8x1xi32> to vector<8x128xi32>
    %35 = arith.cmpi eq, %1, %34 : vector<8x128xi32>
    %36 = arith.extui %35 : vector<8x128xi1> to vector<8x128xi32>
    %37 = arith.sitofp %36 : vector<8x128xi32> to vector<8x128xf32>
    %38 = arith.addf %32, %37 : vector<8x128xf32>
    %39 = vector.extract_strided_slice %0 {offsets = [0, 6], sizes = [8, 1], strides = [1, 1]} : vector<8x8xi32> to vector<8x1xi32>
    %40 = vector.broadcast %39 : vector<8x1xi32> to vector<8x128xi32>
    %41 = arith.cmpi eq, %1, %40 : vector<8x128xi32>
    %42 = arith.extui %41 : vector<8x128xi1> to vector<8x128xi32>
    %43 = arith.sitofp %42 : vector<8x128xi32> to vector<8x128xf32>
    %44 = arith.addf %38, %43 : vector<8x128xf32>
    %45 = vector.extract_strided_slice %0 {offsets = [0, 7], sizes = [8, 1], strides = [1, 1]} : vector<8x8xi32> to vector<8x1xi32>
    %46 = vector.broadcast %45 : vector<8x1xi32> to vector<8x128xi32>
    %47 = arith.cmpi eq, %1, %46 : vector<8x128xi32>
    %48 = arith.extui %47 : vector<8x128xi1> to vector<8x128xi32>
    %49 = arith.sitofp %48 : vector<8x128xi32> to vector<8x128xf32>
    %50 = arith.addf %44, %49 : vector<8x128xf32>
    %cst_1 = arith.constant 1.250000e-01 : f32
    %51 = vector.broadcast %cst_1 : f32 to vector<8x128xf32>
    %52 = arith.mulf %50, %51 : vector<8x128xf32>
    %c0_2 = arith.constant 0 : index
    %c0_3 = arith.constant 0 : index
    %53 = vector.load %arg2[%c0_2, %c0_3] : memref<128x384xf32, #tpu.memory_space<vmem>>, vector<128x384xf32>
    %cst_4 = arith.constant dense<0.000000e+00> : vector<8x384xf32>
    %54 = tpu.matmul %52, %53, %cst_4 {dimension_numbers = #tpu.dot_dimension_numbers<[1], [0], [0], [1], [0, 0, 1, 1], [], []>} : vector<8x128xf32>, vector<128x384xf32>, vector<8x384xf32> -> vector<8x384xf32>
    %c0_5 = arith.constant 0 : index
    %c0_6 = arith.constant 0 : index
    %55 = vector.load %arg3[%c0_5, %c0_6] : memref<384x256xf32, #tpu.memory_space<vmem>>, vector<384x256xf32>
    %cst_7 = arith.constant dense<0.000000e+00> : vector<8x256xf32>
    %56 = tpu.matmul %54, %55, %cst_7 {dimension_numbers = #tpu.dot_dimension_numbers<[1], [0], [0], [1], [0, 0, 1, 1], [], []>} : vector<8x384xf32>, vector<384x256xf32>, vector<8x256xf32> -> vector<8x256xf32>
    %c0_8 = arith.constant 0 : index
    %c0_9 = arith.constant 0 : index
    %57 = vector.load %arg4[%c0_8, %c0_9] : memref<1x256xf32, #tpu.memory_space<vmem>>, vector<1x256xf32>
    %58 = vector.broadcast %57 : vector<1x256xf32> to vector<8x256xf32>
    %59 = arith.addf %56, %58 : vector<8x256xf32>
    %cst_10 = arith.constant 0.000000e+00 : f32
    %60 = vector.broadcast %cst_10 : f32 to vector<8x256xf32>
    %61 = arith.maximumf %59, %60 : vector<8x256xf32>
    %c0_11 = arith.constant 0 : index
    %c0_12 = arith.constant 0 : index
    %62 = vector.load %arg5[%c0_11, %c0_12] : memref<256x256xf32, #tpu.memory_space<vmem>>, vector<256x256xf32>
    %cst_13 = arith.constant dense<0.000000e+00> : vector<8x256xf32>
    %63 = tpu.matmul %61, %62, %cst_13 {dimension_numbers = #tpu.dot_dimension_numbers<[1], [0], [0], [1], [0, 0, 1, 1], [], []>} : vector<8x256xf32>, vector<256x256xf32>, vector<8x256xf32> -> vector<8x256xf32>
    %c0_14 = arith.constant 0 : index
    %c0_15 = arith.constant 0 : index
    %64 = vector.load %arg6[%c0_14, %c0_15] : memref<1x256xf32, #tpu.memory_space<vmem>>, vector<1x256xf32>
    %65 = vector.broadcast %64 : vector<1x256xf32> to vector<8x256xf32>
    %66 = arith.addf %63, %65 : vector<8x256xf32>
    %cst_16 = arith.constant 0.000000e+00 : f32
    %67 = vector.broadcast %cst_16 : f32 to vector<8x256xf32>
    %68 = arith.maximumf %66, %67 : vector<8x256xf32>
    %c0_17 = arith.constant 0 : index
    %c0_18 = arith.constant 0 : index
    %69 = vector.load %arg7[%c0_17, %c0_18] : memref<256x128xf32, #tpu.memory_space<vmem>>, vector<256x128xf32>
    %cst_19 = arith.constant dense<0.000000e+00> : vector<8x128xf32>
    %70 = tpu.matmul %68, %69, %cst_19 {dimension_numbers = #tpu.dot_dimension_numbers<[1], [0], [0], [1], [0, 0, 1, 1], [], []>} : vector<8x256xf32>, vector<256x128xf32>, vector<8x128xf32> -> vector<8x128xf32>
    %c0_20 = arith.constant 0 : index
    %c0_21 = arith.constant 0 : index
    %71 = vector.load %arg8[%c0_20, %c0_21] : memref<1x128xf32, #tpu.memory_space<vmem>>, vector<1x128xf32>
    %72 = vector.broadcast %71 : vector<1x128xf32> to vector<8x128xf32>
    %73 = arith.addf %70, %72 : vector<8x128xf32>
    %c0_22 = arith.constant 0 : index
    %c0_23 = arith.constant 0 : index
    %74 = vector.load %arg9[%c0_22, %c0_23] : memref<8x128xf32, #tpu.memory_space<vmem>>, vector<8x128xf32>
    tpu.vector_store %arg9[%c0_22, %c0_23], %73 {strides = array<i32>} : memref<8x128xf32, #tpu.memory_space<vmem>>, vector<8x128xf32>,
    return
  }
  func.func @transform_0(%arg0: i32) -> (i32, i32) {
    %c0_i32 = arith.constant 0 : i32
    %c0_i32_0 = arith.constant 0 : i32
    return %arg0, %c0_i32 : i32, i32
  }
  func.func @transform_1(%arg0: i32) -> (i32, i32) {
    %c0_i32 = arith.constant 0 : i32
    %c0_i32_0 = arith.constant 0 : i32
    %c0_i32_1 = arith.constant 0 : i32
    return %c0_i32, %c0_i32_0 : i32, i32
  }
  func.func @transform_2(%arg0: i32) -> (i32, i32) {
    %c0_i32 = arith.constant 0 : i32
    %c0_i32_0 = arith.constant 0 : i32
    %c0_i32_1 = arith.constant 0 : i32
    return %c0_i32, %c0_i32_0 : i32, i32
  }
  func.func @transform_3(%arg0: i32) -> (i32, i32) {
    %c0_i32 = arith.constant 0 : i32
    %c0_i32_0 = arith.constant 0 : i32
    %c0_i32_1 = arith.constant 0 : i32
    return %c0_i32, %c0_i32_0 : i32, i32
  }
  func.func @transform_4(%arg0: i32) -> (i32, i32) {
    %c0_i32 = arith.constant 0 : i32
    %c0_i32_0 = arith.constant 0 : i32
    %c0_i32_1 = arith.constant 0 : i32
    return %c0_i32, %c0_i32_0 : i32, i32
  }
  func.func @transform_5(%arg0: i32) -> (i32, i32) {
    %c0_i32 = arith.constant 0 : i32
    %c0_i32_0 = arith.constant 0 : i32
    %c0_i32_1 = arith.constant 0 : i32
    return %c0_i32, %c0_i32_0 : i32, i32
  }
  func.func @transform_6(%arg0: i32) -> (i32, i32) {
    %c0_i32 = arith.constant 0 : i32
    %c0_i32_0 = arith.constant 0 : i32
    %c0_i32_1 = arith.constant 0 : i32
    return %c0_i32, %c0_i32_0 : i32, i32
  }
  func.func @transform_7(%arg0: i32) -> (i32, i32) {
    %c0_i32 = arith.constant 0 : i32
    %c0_i32_0 = arith.constant 0 : i32
    %c0_i32_1 = arith.constant 0 : i32
    return %c0_i32, %c0_i32_0 : i32, i32
  }
  func.func @transform_8(%arg0: i32) -> (i32, i32) {
    %c0_i32 = arith.constant 0 : i32
    %c0_i32_0 = arith.constant 0 : i32
    return %arg0, %c0_i32 : i32, i32
  }
}

</mosaic_0001>

<bundles_post_ra>
// kernel: tpu_custom_call.1
= control target key start
LH: loop header
LB: loop body
LE: loop exit
PB: predicated region body
PF: predicated region fallthrough
CT: control target
= control target key end

     0   :  { %13 = vsyncpa [#allocation3], 0  ;;  %s1263_s0 = inlined_call_operand.hbm [shape: s32[8,8], index: 0, kind: input, shape index: {}]   ;;  %s1264_s1 = inlined_call_operand.hbm [shape: f32[128,384], index: 1, kind: input, shape index: {}]   ;;  %s1265_s2 = inlined_call_operand.hbm [shape: f32[384,256], index: 2, kind: input, shape index: {}]   ;;  %s1266_s3 = inlined_call_operand.vmem [shape: f32[1,256], index: 3, kind: input, shape index: {}]   ;;  %s1267_s4 = inlined_call_operand.hbm [shape: f32[256,256], index: 4, kind: input, shape index: {}]   ;;  %s1268_s5 = inlined_call_operand.vmem [shape: f32[1,256], index: 5, kind: input, shape index: {}]   ;;  %s1269_s6 = inlined_call_operand.hbm [shape: f32[256,128], index: 6, kind: input, shape index: {}]   ;;  %s1270_s7 = inlined_call_operand.vmem [shape: f32[1,128], index: 7, kind: input, shape index: {}]   ;;  %s1271_s8 = inlined_call_operand.hbm [shape: f32[8,128], index: 8, kind: output, shape index: {}]  }
   0x1   :  { %14 = vsyncpa [#allocation6], 0 }
   0x2   :  { %15 = vsyncpa [#allocation9], 0 }
   0x3   :  { %16 = vsyncpa [#allocation4], 0  ;;  %s1128_s27 = smov [#allocation5]  }
   0x4   :  { %s32_s28 = sshll.u32 %s1128_s27, 4  ;;  %s33_s28 = int_to_ptr.vmem [resolvable:$true] %s32_s28 }
   0x5   :  { %s1008_s29 = scalar_lea.vmem %s33_s28, 6144  ;;  %p1013_p1 = scmp.lt.s32.totalorder %s33_s28, %s33_s28 }
   0x6   :  { %p1009_p0 = scmp.ne.s32.totalorder %s33_s28, %s1008_s29  ;;  %p1014_p2 = scmp.lt.s32.totalorder %s1008_s29, %s1008_s29 }
   0x8   :  { %p1015_p3 = por %p1014_p2, %p1013_p1 }
   0xa   :  { %p1016_p4 = pnand %p1015_p3, %p1009_p0 }
   0xc   :  { %1019 = shalt.err (!%p1016_p4)
}
   0xd   :  { %s1129_s30 = smov 384   ;;  %s1130_s9 = smov 24  }
   0xe   :  { %38 = dma.hbm_to_vmem [thread:$0]  %s1264_s1, 6144, %s33_s28, [#allocation6], %s1129_s30, %s1129_s30, %s1130_s9  }
   0xf   :  { %s1131_s12 = smov [#allocation8]   ;;  %s1132_s14 = smov [#allocation2]  }
  0x10   :  { %s58_s13 = sshll.u32 %s1131_s12, 4  ;;  %s23_s15 = sshll.u32 %s1132_s14, 4  ;;  %s59_s13 = int_to_ptr.vmem [resolvable:$true] %s58_s13  ;;  %s24_s15 = int_to_ptr.vmem [resolvable:$true] %s23_s15 }
  0x11   :  { %s1028_s16 = scalar_lea.vmem %s59_s13, 8192  ;;  %p1033_p6 = scmp.lt.s32.totalorder %s59_s13, %s59_s13 }
  0x12   :  { %p1029_p5 = scmp.ne.s32.totalorder %s59_s13, %s1028_s16  ;;  %p1034_p7 = scmp.lt.s32.totalorder %s1028_s16, %s1028_s16 }
  0x14   :  { %p1035_p8 = por %p1034_p7, %p1033_p6 }
  0x16   :  { %p1036_p9 = pnand %p1035_p8, %p1029_p5 }
  0x18   :  { %1039 = shalt.err (!%p1036_p9)
}
  0x19   :  { %s1133_s17 = smov 256   ;;  %s1134_s18 = smov 16  }
  0x1a   :  { %64 = dma.hbm_to_vmem [thread:$0]  %s1267_s4, 8192, %s59_s13, [#allocation9], %s1133_s17, %s1133_s17, %s1134_s18  }
  0x1b   :  { %s1048_s1 = scalar_lea.vmem %s24_s15, 128  ;;  %p1053_p11 = scmp.lt.s32.totalorder %s24_s15, %s24_s15 }
  0x1c   :  { %p1049_p10 = scmp.ne.s32.totalorder %s24_s15, %s1048_s1  ;;  %p1054_p12 = scmp.lt.s32.totalorder %s1048_s1, %s1048_s1 }
  0x1e   :  { %p1055_p13 = por %p1054_p12, %p1053_p11 }
  0x20   :  { %p1056_p0 = pnand %p1055_p13, %p1049_p10 }
  0x22   :  { %1059 = shalt.err (!%p1056_p0)
}
  0x23   :  { %26 = dma.hbm_to_vmem [thread:$0]  %s1263_s0, 128, %s24_s15, [#allocation3]  }
  0x24   :  { %s1135_s23 = smov [#allocation7]   ;;  %s1136_s25 = smov [#allocation10]  }
  0x25   :  { %s44_s24 = sshll.u32 %s1135_s23, 4  ;;  %s72_s26 = sshll.u32 %s1136_s25, 4  ;;  %s45_s24 = int_to_ptr.vmem [resolvable:$true] %s44_s24  ;;  %s73_s26 = int_to_ptr.vmem [resolvable:$true] %s72_s26 }
  0x26   :  { %s1068_s27 = scalar_lea.vmem %s45_s24, 12288  ;;  %p1073_p2 = scmp.lt.s32.totalorder %s45_s24, %s45_s24 }
  0x27   :  { %p1069_p1 = scmp.ne.s32.totalorder %s45_s24, %s1068_s27  ;;  %p1074_p3 = scmp.lt.s32.totalorder %s1068_s27, %s1068_s27 }
  0x29   :  { %p1075_p4 = por %p1074_p3, %p1073_p2 }
  0x2b   :  { %p1076_p5 = pnand %p1075_p4, %p1069_p1 }
  0x2d   :  { %1079 = shalt.err (!%p1076_p5)
}
  0x2e   :  { %50 = dma.hbm_to_vmem [thread:$0]  %s1265_s2, 12288, %s45_s24, [#allocation6], %s1133_s17, %s1133_s17, %s1134_s18  }
  0x2f   :  { %s1088_s29 = scalar_lea.vmem %s73_s26, 4096  ;;  %p1093_p7 = scmp.lt.s32.totalorder %s73_s26, %s73_s26 }
  0x30   :  { %p1089_p6 = scmp.ne.s32.totalorder %s73_s26, %s1088_s29  ;;  %p1094_p8 = scmp.lt.s32.totalorder %s1088_s29, %s1088_s29 }
  0x32   :  { %p1095_p9 = por %p1094_p8, %p1093_p7 }
  0x34   :  { %p1096_p10 = pnand %p1095_p9, %p1089_p6 }
  0x36   :  { %1099 = shalt.err (!%p1096_p10)
}
  0x37   :  { %s1137_s0 = smov 128   ;;  %s1138_s30 = smov 8  }
  0x38   :  { %78 = dma.hbm_to_vmem [thread:$0]  %s1269_s6, 4096, %s73_s26, [#allocation9], %s1137_s0, %s1137_s0, %s1138_s30  }
  0x39   :  { %1120 = dma.done.wait [#allocation3], 128  }
  0x3a   :  { %1121 = vsyncadd [#allocation3], 4294967168 }
  0x3b   :  { %1122 = dma.done.wait [#allocation6], 18432  }
  0x3c   :  { %1123 = vsyncadd [#allocation6], 4294948864 }
  0x3d   :  { %1124 = dma.done.wait [#allocation9], 12288  }
  0x3e   :  { %1125 = vsyncadd [#allocation9], 4294955008  ;;  %v1139_v0 = vmov 2   ;;  %v1140_v1 = vmov 0   ;;  %v1141_v2 = vmov 0.0   ;;  %v1212_v3 = vld [vmem:[#allocation2] sm:$0xff]  ;;  %v97_v60 = vlaneseq }
  0x3f   :  { %993 = vset.pattern.permute.xlu1 %v1139_v0  ;;  %991 = vset.pattern.permute.xlu0 %v1140_v1  ;;  %v202_v4 = vld [vmem:[#allocation5 + $0x170] sm:$0xff]  ;;  %v201_v5 = vld [vmem:[#allocation5 + $0x168] sm:$0xff]  ;;  %v203_v6 = vld [vmem:[#allocation5 + $0x178] sm:$0xff]  ;;  %v1142_v10 = vmov 3   ;;  %v1143_v11 = vmov 1   ;;  %v1144_v17 = vmov 4  }
  0x40   :  { %934 = vmatprep.subr.mxu1 %v1141_v2  ;;  %268 = vmatprep.mubr.f32.mxu0 %v1141_v2  ;;  %v199_v7 = vld [vmem:[#allocation5 + $0x158] sm:$0xff]  ;;  %v200_v8 = vld [vmem:[#allocation5 + $0x160] sm:$0xff]  ;;  %v198_v9 = vld [vmem:[#allocation5 + $0x150] sm:$0xff]  ;;  %v1145_v18 = vmov 5   ;;  %v1146_v25 = vmov 6   ;;  %v1147_v32 = vmov 7  }
  0x41   :  { %114 = vperm.xlu1 %993, %v1212_v3   ;;  %100 = vperm.xlu0 %991, %v1212_v3   ;;  %v196_v12 = vld [vmem:[#allocation5 + $0x140] sm:$0xff]  ;;  %v197_v13 = vld [vmem:[#allocation5 + $0x148] sm:$0xff]  ;;  %v195_v14 = vld [vmem:[#allocation5 + $0x138] sm:$0xff]  ;;  %vm1148_vm0 = vmmov 0   ;;  %v98_v63 = vand.u32 127, %v97_v60  ;;  %s1149_s14 = smov [#allocation11]  }
  0x42   :  { %204 = vmatprep.subr.mxu0 %v202_v4  ;;  %935 = vmatpush3.msra.mxu1 %v203_v6  ;;  %v193_v15 = vld [vmem:[#allocation5 + $0x128] sm:$0xff]  ;;  %v194_v16 = vld [vmem:[#allocation5 + $0x130] sm:$0xff]  ;;  %v192_v19 = vld [vmem:[#allocation5 + $0x120] sm:$0xff]  ;;  %s862_s15 = sshll.u32 %s1149_s14, 4  ;;  %s863_s15 = int_to_ptr.vmem [resolvable:$true] %s862_s15 }
  0x43   :  { %205 = vmatpush1.msra.mxu0 %v201_v5  ;;  %936 = vmatprep.subr.mxu1 %v1141_v2  ;;  %v190_v20 = vld [vmem:[#allocation5 + $0x110] sm:$0xff]  ;;  %v191_v21 = vld [vmem:[#allocation5 + $0x118] sm:$0xff]  ;;  %v189_v22 = vld [vmem:[#allocation5 + $0x108] sm:$0xff]  ;;  %p1105_p12 = scmp.lt.s32.totalorder %s863_s15, %s863_s15 }
  0x44   :  { %206 = vmatprep.subr.mxu0 %v199_v7  ;;  %937 = vmatpush3.msra.mxu1 %v200_v8  ;;  %v187_v23 = vld [vmem:[#allocation5 + $0xf8] sm:$0xff]  ;;  %v186_v24 = vld [vmem:[#allocation5 + $0xf0] sm:$0xff]  ;;  %v188_v26 = vld [vmem:[#allocation5 + $0x100] sm:$0xff] }
  0x45   :  { %994 = vset.pattern.permute.xlu1 %v1142_v10  ;;  %992 = vset.pattern.permute.xlu0 %v1143_v11  ;;  %v184_v27 = vld [vmem:[#allocation5 + $0xe0] sm:$0xff]  ;;  %v183_v28 = vld [vmem:[#allocation5 + $0xd8] sm:$0xff]  ;;  %v185_v29 = vld [vmem:[#allocation5 + $0xe8] sm:$0xff] }
  0x46   :  { %121 = vperm.xlu1 %994, %v1212_v3   ;;  %107 = vperm.xlu0 %992, %v1212_v3   ;;  %v181_v30 = vld [vmem:[#allocation5 + $0xc8] sm:$0xff]  ;;  %v180_v31 = vld [vmem:[#allocation5 + $0xc0] sm:$0xff]  ;;  %v182_v33 = vld [vmem:[#allocation5 + $0xd0] sm:$0xff] }
  0x47   :  { %207 = vmatpush1.msra.mxu0 %v198_v9  ;;  %938 = vmatprep.subr.mxu1 %v1141_v2  ;;  %v178_v34 = vld [vmem:[#allocation5 + $0xb0] sm:$0xff]  ;;  %v177_v35 = vld [vmem:[#allocation5 + $0xa8] sm:$0xff]  ;;  %v179_v36 = vld [vmem:[#allocation5 + $0xb8] sm:$0xff] }
  0x48   :  { %208 = vmatprep.subr.mxu0 %v196_v12  ;;  %939 = vmatpush3.msra.mxu1 %v197_v13  ;;  %v175_v37 = vld [vmem:[#allocation5 + $0x98] sm:$0xff]  ;;  %v174_v38 = vld [vmem:[#allocation5 + $0x90] sm:$0xff]  ;;  %v176_v39 = vld [vmem:[#allocation5 + $0xa0] sm:$0xff] }
  0x49   :  { %209 = vmatpush1.msra.mxu0 %v195_v14  ;;  %940 = vmatprep.subr.mxu1 %v1141_v2  ;;  %v172_v40 = vld [vmem:[#allocation5 + $0x80] sm:$0xff]  ;;  %v171_v41 = vld [vmem:[#allocation5 + $0x78] sm:$0xff]  ;;  %v173_v42 = vld [vmem:[#allocation5 + $0x88] sm:$0xff] }
  0x4a   :  { %995 = vset.pattern.permute.xlu1 %v1144_v17  ;;  %996 = vset.pattern.permute.xlu0 %v1145_v18  ;;  %v169_v43 = vld [vmem:[#allocation5 + $0x68] sm:$0xff]  ;;  %v168_v44 = vld [vmem:[#allocation5 + $0x60] sm:$0xff]  ;;  %v170_v45 = vld [vmem:[#allocation5 + $0x70] sm:$0xff] }
  0x4b   :  { %128 = vperm.xlu1 %995, %v1212_v3   ;;  %135 = vperm.xlu0 %996, %v1212_v3   ;;  %v166_v46 = vld [vmem:[#allocation5 + $0x50] sm:$0xff]  ;;  %v165_v47 = vld [vmem:[#allocation5 + $0x48] sm:$0xff]  ;;  %v167_v48 = vld [vmem:[#allocation5 + $0x58] sm:$0xff] }
  0x4c   :  { %210 = vmatprep.subr.mxu0 %v193_v15  ;;  %941 = vmatpush3.msra.mxu1 %v194_v16  ;;  %v163_v49 = vld [vmem:[#allocation5 + $0x38] sm:$0xff]  ;;  %v162_v50 = vld [vmem:[#allocation5 + $0x30] sm:$0xff]  ;;  %v164_v51 = vld [vmem:[#allocation5 + $0x40] sm:$0xff] }
  0x4d   :  { %211 = vmatpush1.msra.mxu0 %v192_v19  ;;  %942 = vmatprep.subr.mxu1 %v1141_v2  ;;  %v160_v52 = vld [vmem:[#allocation5 + $0x20] sm:$0xff]  ;;  %v159_v53 = vld [vmem:[#allocation5 + $0x18] sm:$0xff]  ;;  %v161_v54 = vld [vmem:[#allocation5 + $0x28] sm:$0xff] }
  0x4e   :  { %212 = vmatprep.subr.mxu0 %v190_v20  ;;  %943 = vmatpush3.msra.mxu1 %v191_v21  ;;  %v157_v55 = vld [vmem:[#allocation5 + $0x8] sm:$0xff]  ;;  %v156_v56 = vld [vmem:[#allocation5] sm:$0xff]  ;;  %v158_v57 = vld [vmem:[#allocation5 + $0x10] sm:$0xff] }
  0x4f   :  { %997 = vset.pattern.permute.xlu1 %v1146_v25  ;;  %213 = vmatpush1.msra.mxu0 %v189_v22  ;;  %v376_v58 = vld [vmem:[#allocation7 + $0xf8] sm:$0xff]  ;;  %v374_v25 = vld [vmem:[#allocation7 + $0xe8] sm:$0xff] }
  0x50   :  { %142 = vperm.xlu1 %997, %v1212_v3   ;;  %214 = vmatprep.subr.mxu0 %v187_v23  ;;  %v440_v59 = vld [vmem:[#allocation7 + $0x2f8] sm:$0xff]  ;;  %v375_v23 = vld [vmem:[#allocation7 + $0xf0] sm:$0xff] }
  0x51   :  { %944 = vmatprep.subr.mxu1 %v1141_v2  ;;  %215 = vmatpush1.msra.mxu0 %v186_v24  ;;  %v439_v24 = vld [vmem:[#allocation7 + $0x2f0] sm:$0xff] }
  0x52   :  { %945 = vmatpush3.msra.mxu1 %v188_v26  ;;  %216 = vmatprep.subr.mxu0 %v184_v27  ;;  %v438_v26 = vld [vmem:[#allocation7 + $0x2e8] sm:$0xff]  ;;  %v373_v27 = vld [vmem:[#allocation7 + $0xe0] sm:$0xff] }
  0x53   :  { %946 = vmatprep.subr.mxu1 %v1141_v2  ;;  %217 = vmatpush1.msra.mxu0 %v183_v28  ;;  %v437_v28 = vld [vmem:[#allocation7 + $0x2e0] sm:$0xff] }
  0x54   :  { %998 = vset.pattern.permute.xlu1 %v1147_v32  ;;  %947 = vmatpush3.msra.mxu1 %v185_v29  ;;  %v372_v29 = vld [vmem:[#allocation7 + $0xd8] sm:$0xff] }
  0x55   :  { %149 = vperm.xlu1 %998, %v1212_v3   ;;  %218 = vmatprep.subr.mxu0 %v181_v30  ;;  %v436_v30 = vld [vmem:[#allocation7 + $0x2d8] sm:$0xff] }
  0x56   :  { %948 = vmatprep.subr.mxu1 %v1141_v2  ;;  %219 = vmatpush1.msra.mxu0 %v180_v31  ;;  %v371_v31 = vld [vmem:[#allocation7 + $0xd0] sm:$0xff] }
  0x57   :  { %949 = vmatpush3.msra.mxu1 %v182_v33  ;;  %220 = vmatprep.subr.mxu0 %v178_v34  ;;  %v370_v33 = vld [vmem:[#allocation7 + $0xc8] sm:$0xff] }
  0x58   :  { %950 = vmatprep.subr.mxu1 %v1141_v2  ;;  %221 = vmatpush1.msra.mxu0 %v177_v35  ;;  %v434_v34 = vld [vmem:[#allocation7 + $0x2c8] sm:$0xff]  ;;  %v369_v35 = vld [vmem:[#allocation7 + $0xc0] sm:$0xff] }
  0x59   :  { %951 = vmatpush3.msra.mxu1 %v179_v36  ;;  %222 = vmatprep.subr.mxu0 %v175_v37  ;;  %v433_v36 = vld [vmem:[#allocation7 + $0x2c0] sm:$0xff]  ;;  %v368_v37 = vld [vmem:[#allocation7 + $0xb8] sm:$0xff] }
  0x5a   :  { %952 = vmatprep.subr.mxu1 %v1141_v2  ;;  %223 = vmatpush1.msra.mxu0 %v174_v38  ;;  %v432_v38 = vld [vmem:[#allocation7 + $0x2b8] sm:$0xff] }
  0x5b   :  { %953 = vmatpush3.msra.mxu1 %v176_v39  ;;  %224 = vmatprep.subr.mxu0 %v172_v40  ;;  %v367_v39 = vld [vmem:[#allocation7 + $0xb0] sm:$0xff] }
  0x5c   :  { %954 = vmatprep.subr.mxu1 %v1141_v2  ;;  %225 = vmatpush1.msra.mxu0 %v171_v41  ;;  %v431_v40 = vld [vmem:[#allocation7 + $0x2b0] sm:$0xff]  ;;  %v366_v41 = vld [vmem:[#allocation7 + $0xa8] sm:$0xff] }
  0x5d   :  { %955 = vmatpush3.msra.mxu1 %v173_v42  ;;  %226 = vmatprep.subr.mxu0 %v169_v43  ;;  %v430_v42 = vld [vmem:[#allocation7 + $0x2a8] sm:$0xff]  ;;  %v365_v43 = vld [vmem:[#allocation7 + $0xa0] sm:$0xff] }
  0x5e   :  { %956 = vmatprep.subr.mxu1 %v1141_v2  ;;  %227 = vmatpush1.msra.mxu0 %v168_v44  ;;  %v429_v44 = vld [vmem:[#allocation7 + $0x2a0] sm:$0xff] }
  0x5f   :  { %957 = vmatpush3.msra.mxu1 %v170_v45  ;;  %228 = vmatprep.subr.mxu0 %v166_v46  ;;  %v364_v45 = vld [vmem:[#allocation7 + $0x98] sm:$0xff] }
  0x60   :  { %958 = vmatprep.subr.mxu1 %v1141_v2  ;;  %229 = vmatpush1.msra.mxu0 %v165_v47  ;;  %v428_v46 = vld [vmem:[#allocation7 + $0x298] sm:$0xff]  ;;  %v363_v47 = vld [vmem:[#allocation7 + $0x90] sm:$0xff] }
  0x61   :  { %959 = vmatpush3.msra.mxu1 %v167_v48  ;;  %230 = vmatprep.subr.mxu0 %v163_v49  ;;  %v427_v48 = vld [vmem:[#allocation7 + $0x290] sm:$0xff]  ;;  %v362_v49 = vld [vmem:[#allocation7 + $0x88] sm:$0xff] }
  0x62   :  { %960 = vmatprep.subr.mxu1 %v1141_v2  ;;  %231 = vmatpush1.msra.mxu0 %v162_v50  ;;  %v426_v50 = vld [vmem:[#allocation7 + $0x288] sm:$0xff] }
  0x63   :  { %961 = vmatpush3.msra.mxu1 %v164_v51  ;;  %232 = vmatprep.subr.mxu0 %v160_v52  ;;  %v361_v51 = vld [vmem:[#allocation7 + $0x80] sm:$0xff] }
  0x64   :  { %962 = vmatprep.subr.mxu1 %v1141_v2  ;;  %233 = vmatpush1.msra.mxu0 %v159_v53  ;;  %v425_v52 = vld [vmem:[#allocation7 + $0x280] sm:$0xff]  ;;  %v360_v53 = vld [vmem:[#allocation7 + $0x78] sm:$0xff] }
  0x65   :  { %963 = vmatpush3.msra.mxu1 %v161_v54  ;;  %234 = vmatprep.subr.mxu0 %v157_v55  ;;  %v424_v54 = vld [vmem:[#allocation7 + $0x278] sm:$0xff]  ;;  %v359_v55 = vld [vmem:[#allocation7 + $0x70] sm:$0xff] }
  0x66   :  { %964 = vmatprep.subr.mxu1 %v1141_v2  ;;  %235 = vmatpush1.msra.mxu0 %v156_v56  ;;  %v423_v56 = vld [vmem:[#allocation7 + $0x270] sm:$0xff] }
  0x67   :  { %965 = vmatpush3.msra.mxu1 %v158_v57  ;;  %966 = vmatprep.mubr.msk.f32.mxu1 %vm1148_vm0, %v1141_v2  ;;  %v358_v57 = vld [vmem:[#allocation7 + $0x68] sm:$0xff] }
  0x68   :  { %453 = vmatprep.subr.mxu0 %v376_v58  ;;  %999 = vset.pattern.permute.xlu0 %v1147_v32  ;;  %v435_v32 = vld [vmem:[#allocation7 + $0x2d0] sm:$0xff]  ;;  %v422_v58 = vld [vmem:[#allocation7 + $0x268] sm:$0xff] }
  0x69   :  { %524 = vmatprep.subr.mxu1 %v440_v59  ;;  %v357_v59 = vld [vmem:[#allocation7 + $0x60] sm:$0xff] }
  0xbc   :  { %v115_v61 = vpop.permute.xlu1 %114  ;;  %v101_v62 = vpop.permute.xlu0 %100 }
  0xbd   :  { %vm102_vm1 = vcmp.eq.s32.totalorder %v98_v63, %v101_v62  ;;  %vm116_vm2 = vcmp.eq.s32.totalorder %v98_v63, %v115_v61  ;;  %v421_v61 = vld [vmem:[#allocation7 + $0x260] sm:$0xff]  ;;  %v356_v62 = vld [vmem:[#allocation7 + $0x58] sm:$0xff] }
  0xbe   :  { %v873_v3 = vsel %vm102_vm1, 1.0, %v1141_v2  ;;  %v875_v6 = vsel %vm116_vm2, 1.0, %v1141_v2 }
  0xc1   :  { %v122_v0 = vpop.permute.xlu1 %121  ;;  %v108_v1 = vpop.permute.xlu0 %107 }
  0xc2   :  { %vm109_vm3 = vcmp.eq.s32.totalorder %v98_v63, %v108_v1  ;;  %vm123_vm4 = vcmp.eq.s32.totalorder %v98_v63, %v122_v0  ;;  %v355_v0 = vld [vmem:[#allocation7 + $0x50] sm:$0xff] }
  0xc3   :  { %v874_v4 = vsel %vm109_vm3, 1.0, %v1141_v2  ;;  %v876_v10 = vsel %vm123_vm4, 1.0, %v1141_v2  ;;  %v419_v1 = vld [vmem:[#allocation7 + $0x250] sm:$0xff] }
  0xc4   :  { %v112_v5 = vadd.f32 %v874_v4, %v873_v3  ;;  %v354_v3 = vld [vmem:[#allocation7 + $0x48] sm:$0xff] }
  0xc5   :  { %v418_v4 = vld [vmem:[#allocation7 + $0x248] sm:$0xff] }
  0xc6   :  { %v119_v7 = vadd.f32 %v875_v6, %v112_v5  ;;  %v129_v8 = vpop.permute.xlu1 %128  ;;  %v136_v9 = vpop.permute.xlu0 %135  ;;  %v353_v5 = vld [vmem:[#allocation7 + $0x40] sm:$0xff] }
  0xc7   :  { %vm130_vm5 = vcmp.eq.s32.totalorder %v98_v63, %v129_v8  ;;  %vm137_vm6 = vcmp.eq.s32.totalorder %v98_v63, %v136_v9  ;;  %v417_v6 = vld [vmem:[#allocation7 + $0x240] sm:$0xff]  ;;  %v416_v8 = vld [vmem:[#allocation7 + $0x238] sm:$0xff]  ;;  %v351_v9 = vld [vmem:[#allocation7 + $0x30] sm:$0xff] }
  0xc8   :  { %v126_v11 = vadd.f32 %v876_v10, %v119_v7  ;;  %v877_v12 = vsel %vm130_vm5, 1.0, %v1141_v2  ;;  %v878_v14 = vsel %vm137_vm6, 1.0, %v1141_v2  ;;  %v352_v7 = vld [vmem:[#allocation7 + $0x38] sm:$0xff]  ;;  %v415_v10 = vld [vmem:[#allocation7 + $0x230] sm:$0xff] }
  0xca   :  { %v133_v13 = vadd.f32 %v877_v12, %v126_v11  ;;  %v350_v11 = vld [vmem:[#allocation7 + $0x28] sm:$0xff] }
  0xcb   :  { %v143_v15 = vpop.permute.xlu1 %142  ;;  %v414_v12 = vld [vmem:[#allocation7 + $0x228] sm:$0xff] }
  0xcc   :  { %vm144_vm7 = vcmp.eq.s32.totalorder %v98_v63, %v143_v15  ;;  %v140_v16 = vadd.f32 %v878_v14, %v133_v13  ;;  %v349_v13 = vld [vmem:[#allocation7 + $0x20] sm:$0xff]  ;;  %v348_v15 = vld [vmem:[#allocation7 + $0x18] sm:$0xff] }
  0xcd   :  { %v879_v17 = vsel %vm144_vm7, 1.0, %v1141_v2  ;;  %v413_v14 = vld [vmem:[#allocation7 + $0x220] sm:$0xff] }
  0xce   :  { %v147_v19 = vadd.f32 %v879_v17, %v140_v16  ;;  %v412_v16 = vld [vmem:[#allocation7 + $0x218] sm:$0xff]  ;;  %v347_v17 = vld [vmem:[#allocation7 + $0x10] sm:$0xff] }
  0xd0   :  { %v150_v18 = vpop.permute.xlu1 %149 }
  0xd1   :  { %vm151_vm8 = vcmp.eq.s32.totalorder %v98_v63, %v150_v18  ;;  %v420_v63 = vld [vmem:[#allocation7 + $0x258] sm:$0xff]  ;;  %v411_v18 = vld [vmem:[#allocation7 + $0x210] sm:$0xff] }
  0xd2   :  { %v880_v20 = vsel %vm151_vm8, 1.0, %v1141_v2 }
  0xd3   :  { %v154_v21 = vadd.f32 %v880_v20, %v147_v19  ;;  %v346_v19 = vld [vmem:[#allocation7 + $0x8] sm:$0xff] }
  0xd4   :  { %v410_v20 = vld [vmem:[#allocation7 + $0x208] sm:$0xff] }
  0xd5   :  { %v155_v22 = vmul.f32 0.125, %v154_v21  ;;  %v345_v21 = vld [vmem:[#allocation7] sm:$0xff] }
  0xd7   :  { %269 = vmatmul.mubr.f32.vlgmr.msra.gmra.mxu0 %v155_v22  ;;  %967 = vmatmul.mubr.f32.vlgmr.msra.gmra.mxu1 %v155_v22  ;;  %v408_v22 = vld [vmem:[#allocation7 + $0x1f8] sm:$0xff] }
  0xd8   :  { %454 = vmatpush1.msra.mxu0 %v375_v23  ;;  %525 = vmatpush1.msra.mxu1 %v439_v24  ;;  %v407_v23 = vld [vmem:[#allocation7 + $0x1f0] sm:$0xff]  ;;  %v406_v24 = vld [vmem:[#allocation7 + $0x1e8] sm:$0xff] }
  0xd9   :  { %455 = vmatprep.subr.mxu0 %v374_v25  ;;  %526 = vmatprep.subr.mxu1 %v438_v26  ;;  %v405_v25 = vld [vmem:[#allocation7 + $0x1e0] sm:$0xff]  ;;  %v404_v26 = vld [vmem:[#allocation7 + $0x1d8] sm:$0xff] }
  0xda   :  { %456 = vmatpush1.msra.mxu0 %v373_v27  ;;  %527 = vmatpush1.msra.mxu1 %v437_v28  ;;  %v403_v27 = vld [vmem:[#allocation7 + $0x1d0] sm:$0xff]  ;;  %v402_v28 = vld [vmem:[#allocation7 + $0x1c8] sm:$0xff] }
  0xdb   :  { %457 = vmatprep.subr.mxu0 %v372_v29  ;;  %528 = vmatprep.subr.mxu1 %v436_v30  ;;  %v401_v29 = vld [vmem:[#allocation7 + $0x1c0] sm:$0xff]  ;;  %v400_v30 = vld [vmem:[#allocation7 + $0x1b8] sm:$0xff] }
  0xdc   :  { %458 = vmatpush1.msra.mxu0 %v371_v31  ;;  %529 = vmatpush1.msra.mxu1 %v435_v32  ;;  %v399_v31 = vld [vmem:[#allocation7 + $0x1b0] sm:$0xff]  ;;  %v398_v32 = vld [vmem:[#allocation7 + $0x1a8] sm:$0xff] }
  0xdd   :  { %459 = vmatprep.subr.mxu0 %v370_v33  ;;  %530 = vmatprep.subr.mxu1 %v434_v34  ;;  %v397_v33 = vld [vmem:[#allocation7 + $0x1a0] sm:$0xff]  ;;  %v395_v34 = vld [vmem:[#allocation7 + $0x190] sm:$0xff] }
  0xde   :  { %460 = vmatpush1.msra.mxu0 %v369_v35  ;;  %531 = vmatpush1.msra.mxu1 %v433_v36  ;;  %v394_v35 = vld [vmem:[#allocation7 + $0x188] sm:$0xff]  ;;  %v393_v36 = vld [vmem:[#allocation7 + $0x180] sm:$0xff] }
  0xdf   :  { %461 = vmatprep.subr.mxu0 %v368_v37  ;;  %532 = vmatprep.subr.mxu1 %v432_v38  ;;  %v392_v37 = vld [vmem:[#allocation7 + $0x178] sm:$0xff]  ;;  %v391_v38 = vld [vmem:[#allocation7 + $0x170] sm:$0xff] }
  0xe0   :  { %462 = vmatpush1.msra.mxu0 %v367_v39  ;;  %533 = vmatpush1.msra.mxu1 %v431_v40  ;;  %v390_v39 = vld [vmem:[#allocation7 + $0x168] sm:$0xff]  ;;  %v389_v40 = vld [vmem:[#allocation7 + $0x160] sm:$0xff] }
  0xe1   :  { %463 = vmatprep.subr.mxu0 %v366_v41  ;;  %534 = vmatprep.subr.mxu1 %v430_v42  ;;  %v388_v41 = vld [vmem:[#allocation7 + $0x158] sm:$0xff]  ;;  %v387_v42 = vld [vmem:[#allocation7 + $0x150] sm:$0xff] }
  0xe2   :  { %464 = vmatpush1.msra.mxu0 %v365_v43  ;;  %535 = vmatpush1.msra.mxu1 %v429_v44  ;;  %v386_v43 = vld [vmem:[#allocation7 + $0x148] sm:$0xff]  ;;  %v385_v44 = vld [vmem:[#allocation7 + $0x140] sm:$0xff] }
  0xe3   :  { %465 = vmatprep.subr.mxu0 %v364_v45  ;;  %536 = vmatprep.subr.mxu1 %v428_v46  ;;  %v384_v45 = vld [vmem:[#allocation7 + $0x138] sm:$0xff]  ;;  %v383_v46 = vld [vmem:[#allocation7 + $0x130] sm:$0xff] }
  0xe4   :  { %466 = vmatpush1.msra.mxu0 %v363_v47  ;;  %537 = vmatpush1.msra.mxu1 %v427_v48  ;;  %v382_v47 = vld [vmem:[#allocation7 + $0x128] sm:$0xff]  ;;  %v381_v48 = vld [vmem:[#allocation7 + $0x120] sm:$0xff] }
  0xe5   :  { %467 = vmatprep.subr.mxu0 %v362_v49  ;;  %538 = vmatprep.subr.mxu1 %v426_v50  ;;  %v380_v49 = vld [vmem:[#allocation7 + $0x118] sm:$0xff]  ;;  %v409_v50 = vld [vmem:[#allocation7 + $0x200] sm:$0xff] }
  0xe6   :  { %468 = vmatpush1.msra.mxu0 %v361_v51  ;;  %539 = vmatpush1.msra.mxu1 %v425_v52  ;;  %v379_v51 = vld [vmem:[#allocation7 + $0x110] sm:$0xff]  ;;  %v378_v52 = vld [vmem:[#allocation7 + $0x108] sm:$0xff] }
  0xe7   :  { %469 = vmatprep.subr.mxu0 %v360_v53  ;;  %540 = vmatprep.subr.mxu1 %v424_v54  ;;  %v377_v53 = vld [vmem:[#allocation7 + $0x100] sm:$0xff]  ;;  %v628_v54 = vld [vmem:[#allocation8 + $0xf8] sm:$0xff] }
  0xe8   :  { %470 = vmatpush1.msra.mxu0 %v359_v55  ;;  %541 = vmatpush1.msra.mxu1 %v423_v56  ;;  %v627_v55 = vld [vmem:[#allocation8 + $0xf0] sm:$0xff] }
  0xe9   :  { %471 = vmatprep.subr.mxu0 %v358_v57  ;;  %542 = vmatprep.subr.mxu1 %v422_v58  ;;  %v626_v58 = vld [vmem:[#allocation8 + $0xe8] sm:$0xff] }
  0xea   :  { %472 = vmatpush1.msra.mxu0 %v357_v59  ;;  %543 = vmatpush1.msra.mxu1 %v421_v61  ;;  %v625_v59 = vld [vmem:[#allocation8 + $0xe0] sm:$0xff] }
  0xeb   :  { %473 = vmatprep.subr.mxu0 %v356_v62  ;;  %544 = vmatprep.subr.mxu1 %v420_v63  ;;  %v624_v63 = vld [vmem:[#allocation8 + $0xd8] sm:$0xff] }
  0xec   :  { %474 = vmatpush1.msra.mxu0 %v355_v0  ;;  %545 = vmatpush1.msra.mxu1 %v419_v1  ;;  %v623_v0 = vld [vmem:[#allocation8 + $0xd0] sm:$0xff]  ;;  %v622_v1 = vld [vmem:[#allocation8 + $0xc8] sm:$0xff] }
  0xed   :  { %475 = vmatprep.subr.mxu0 %v354_v3  ;;  %546 = vmatprep.subr.mxu1 %v418_v4  ;;  %v621_v3 = vld [vmem:[#allocation8 + $0xc0] sm:$0xff]  ;;  %v620_v4 = vld [vmem:[#allocation8 + $0xb8] sm:$0xff] }
  0xee   :  { %476 = vmatpush1.msra.mxu0 %v353_v5  ;;  %547 = vmatpush1.msra.mxu1 %v417_v6  ;;  %v619_v5 = vld [vmem:[#allocation8 + $0xb0] sm:$0xff]  ;;  %v618_v6 = vld [vmem:[#allocation8 + $0xa8] sm:$0xff] }
  0xef   :  { %477 = vmatprep.subr.mxu0 %v352_v7  ;;  %548 = vmatprep.subr.mxu1 %v416_v8  ;;  %v617_v7 = vld [vmem:[#allocation8 + $0xa0] sm:$0xff]  ;;  %v616_v8 = vld [vmem:[#allocation8 + $0x98] sm:$0xff] }
  0xf0   :  { %478 = vmatpush1.msra.mxu0 %v351_v9  ;;  %549 = vmatpush1.msra.mxu1 %v415_v10  ;;  %v615_v9 = vld [vmem:[#allocation8 + $0x90] sm:$0xff]  ;;  %v614_v10 = vld [vmem:[#allocation8 + $0x88] sm:$0xff] }
  0xf1   :  { %479 = vmatprep.subr.mxu0 %v350_v11  ;;  %550 = vmatprep.subr.mxu1 %v414_v12  ;;  %v613_v11 = vld [vmem:[#allocation8 + $0x80] sm:$0xff]  ;;  %v612_v12 = vld [vmem:[#allocation8 + $0x78] sm:$0xff] }
  0xf2   :  { %480 = vmatpush1.msra.mxu0 %v349_v13  ;;  %551 = vmatpush1.msra.mxu1 %v413_v14  ;;  %v611_v13 = vld [vmem:[#allocation8 + $0x70] sm:$0xff]  ;;  %v610_v14 = vld [vmem:[#allocation8 + $0x68] sm:$0xff] }
  0xf3   :  { %481 = vmatprep.subr.mxu0 %v348_v15  ;;  %552 = vmatprep.subr.mxu1 %v412_v16  ;;  %v609_v15 = vld [vmem:[#allocation8 + $0x60] sm:$0xff]  ;;  %v608_v16 = vld [vmem:[#allocation8 + $0x58] sm:$0xff] }
  0xf4   :  { %482 = vmatpush1.msra.mxu0 %v347_v17  ;;  %553 = vmatpush1.msra.mxu1 %v411_v18  ;;  %v607_v17 = vld [vmem:[#allocation8 + $0x50] sm:$0xff]  ;;  %v606_v18 = vld [vmem:[#allocation8 + $0x48] sm:$0xff] }
  0xf5   :  { %483 = vmatprep.subr.mxu0 %v346_v19  ;;  %554 = vmatprep.subr.mxu1 %v410_v20  ;;  %v605_v19 = vld [vmem:[#allocation8 + $0x40] sm:$0xff]  ;;  %v604_v20 = vld [vmem:[#allocation8 + $0x38] sm:$0xff] }
  0xf6   :  { %484 = vmatpush1.msra.mxu0 %v345_v21  ;;  %588 = vmatprep.mubr.f32.mxu1 %v1141_v2  ;;  %v396_v2 = vld [vmem:[#allocation7 + $0x198] sm:$0xff]  ;;  %v603_v21 = vld [vmem:[#allocation8 + $0x30] sm:$0xff] }
  0xf7   :  { %485 = vmatprep.subr.mxu0 %v408_v22  ;;  %555 = vmatpush1.msra.mxu1 %v409_v50  ;;  %v602_v22 = vld [vmem:[#allocation8 + $0x28] sm:$0xff]  ;;  %v637_v50 = vld [vmem:[#allocation8 + $0x140] sm:$0xff] }
  0xf8   :  { %486 = vmatpush2.msra.mxu0 %v407_v23  ;;  %673 = vmatprep.subr.mxu1 %v628_v54  ;;  %v601_v23 = vld [vmem:[#allocation8 + $0x20] sm:$0xff] }
  0xf9   :  { %487 = vmatprep.subr.mxu0 %v406_v24  ;;  %v600_v24 = vld [vmem:[#allocation8 + $0x18] sm:$0xff]  ;;  %v633_v54 = vld [vmem:[#allocation8 + $0x120] sm:$0xff] }
  0xfa   :  { %488 = vmatpush2.msra.mxu0 %v405_v25  ;;  %v599_v25 = vld [vmem:[#allocation8 + $0x10] sm:$0xff] }
  0xfb   :  { %489 = vmatprep.subr.mxu0 %v404_v26  ;;  %v598_v26 = vld [vmem:[#allocation8 + $0x8] sm:$0xff] }
  0xfc   :  { %490 = vmatpush2.msra.mxu0 %v403_v27  ;;  %v597_v27 = vld [vmem:[#allocation8] sm:$0xff] }
  0xfd   :  { %491 = vmatprep.subr.mxu0 %v402_v28  ;;  %v660_v28 = vld [vmem:[#allocation8 + $0x1f8] sm:$0xff] }
  0xfe   :  { %492 = vmatpush2.msra.mxu0 %v401_v29  ;;  %v659_v29 = vld [vmem:[#allocation8 + $0x1f0] sm:$0xff] }
  0xff   :  { %493 = vmatprep.subr.mxu0 %v400_v30  ;;  %v658_v30 = vld [vmem:[#allocation8 + $0x1e8] sm:$0xff] }
 0x100   :  { %494 = vmatpush2.msra.mxu0 %v399_v31  ;;  %v657_v31 = vld [vmem:[#allocation8 + $0x1e0] sm:$0xff] }
 0x101   :  { %495 = vmatprep.subr.mxu0 %v398_v32  ;;  %v656_v32 = vld [vmem:[#allocation8 + $0x1d8] sm:$0xff] }
 0x102   :  { %496 = vmatpush2.msra.mxu0 %v397_v33  ;;  %v655_v33 = vld [vmem:[#allocation8 + $0x1d0] sm:$0xff] }
 0x103   :  { %497 = vmatprep.subr.mxu0 %v396_v2  ;;  %v654_v2 = vld [vmem:[#allocation8 + $0x1c8] sm:$0xff] }
 0x104   :  { %498 = vmatpush2.msra.mxu0 %v395_v34  ;;  %v653_v34 = vld [vmem:[#allocation8 + $0x1c0] sm:$0xff] }
 0x105   :  { %499 = vmatprep.subr.mxu0 %v394_v35  ;;  %v652_v35 = vld [vmem:[#allocation8 + $0x1b8] sm:$0xff] }
 0x106   :  { %500 = vmatpush2.msra.mxu0 %v393_v36  ;;  %v651_v36 = vld [vmem:[#allocation8 + $0x1b0] sm:$0xff] }
 0x107   :  { %501 = vmatprep.subr.mxu0 %v392_v37  ;;  %v650_v37 = vld [vmem:[#allocation8 + $0x1a8] sm:$0xff] }
 0x108   :  { %502 = vmatpush2.msra.mxu0 %v391_v38  ;;  %v649_v38 = vld [vmem:[#allocation8 + $0x1a0] sm:$0xff] }
 0x109   :  { %503 = vmatprep.subr.mxu0 %v390_v39  ;;  %v648_v39 = vld [vmem:[#allocation8 + $0x198] sm:$0xff] }
 0x10a   :  { %504 = vmatpush2.msra.mxu0 %v389_v40  ;;  %v647_v40 = vld [vmem:[#allocation8 + $0x190] sm:$0xff] }
 0x10b   :  { %505 = vmatprep.subr.mxu0 %v388_v41  ;;  %v646_v41 = vld [vmem:[#allocation8 + $0x188] sm:$0xff] }
 0x10c   :  { %506 = vmatpush2.msra.mxu0 %v387_v42  ;;  %v645_v42 = vld [vmem:[#allocation8 + $0x180] sm:$0xff] }
 0x10d   :  { %507 = vmatprep.subr.mxu0 %v386_v43  ;;  %v644_v43 = vld [vmem:[#allocation8 + $0x178] sm:$0xff] }
 0x10e   :  { %508 = vmatpush2.msra.mxu0 %v385_v44  ;;  %v643_v44 = vld [vmem:[#allocation8 + $0x170] sm:$0xff] }
 0x10f   :  { %509 = vmatprep.subr.mxu0 %v384_v45  ;;  %v642_v45 = vld [vmem:[#allocation8 + $0x168] sm:$0xff] }
 0x110   :  { %510 = vmatpush2.msra.mxu0 %v383_v46  ;;  %v641_v46 = vld [vmem:[#allocation8 + $0x160] sm:$0xff] }
 0x111   :  { %511 = vmatprep.subr.mxu0 %v382_v47  ;;  %v640_v47 = vld [vmem:[#allocation8 + $0x158] sm:$0xff] }
 0x112   :  { %512 = vmatpush2.msra.mxu0 %v381_v48  ;;  %v639_v48 = vld [vmem:[#allocation8 + $0x150] sm:$0xff] }
 0x113   :  { %513 = vmatprep.subr.mxu0 %v380_v49  ;;  %v638_v49 = vld [vmem:[#allocation8 + $0x148] sm:$0xff] }
 0x114   :  { %514 = vmatpush2.msra.mxu0 %v379_v51  ;;  %v636_v51 = vld [vmem:[#allocation8 + $0x138] sm:$0xff] }
 0x115   :  { %515 = vmatprep.subr.mxu0 %v378_v52  ;;  %v635_v52 = vld [vmem:[#allocation8 + $0x130] sm:$0xff] }
 0x116   :  { %516 = vmatpush2.msra.mxu0 %v377_v53  ;;  %v634_v53 = vld [vmem:[#allocation8 + $0x128] sm:$0xff] }
 0x197   :  { %v270_v56 = vpop.f32.mrf.mxu0  ;;  %v341_v57 = vpop.f32.mrf.mxu1 }
 0x198   :  { %589 = vmatmul.mubr.f32.vlgmr.msra.gmra.mxu1 %v341_v57  ;;  %v630_v57 = vld [vmem:[#allocation8 + $0x108] sm:$0xff] }
 0x199   :  { %v272_v61 = vpop.f32.mrf.mxu0  ;;  %v968_v62 = vpop.f32.mrf.mxu1  ;;  %674 = vmatpush1.msra.mxu1 %v627_v55  ;;  %v632_v55 = vld [vmem:[#allocation8 + $0x118] sm:$0xff] }
 0x19a   :  { %517 = vmatprep.mubr.f32.mxu0 %v272_v61  ;;  %675 = vmatprep.subr.mxu1 %v626_v58  ;;  %v629_v58 = vld [vmem:[#allocation8 + $0x100] sm:$0xff]  ;;  %v761_v61 = vld [vmem:[#allocation10 + $0x78] sm:$0xff]  ;;  %v776_v62 = vld [vmem:[#allocation10 + $0xf0] sm:$0xff] }
 0x19b   :  { %518 = vmatmul.mubr.f32.vlgmr.msra.gmra.mxu0 %v270_v56  ;;  %676 = vmatpush1.msra.mxu1 %v625_v59  ;;  %v631_v56 = vld [vmem:[#allocation8 + $0x110] sm:$0xff]  ;;  %v777_v59 = vld [vmem:[#allocation10 + $0xf8] sm:$0xff] }
 0x19c   :  { %677 = vmatprep.subr.mxu1 %v624_v63  ;;  %899 = vmatprep.subr.mxu0 %v777_v59  ;;  %v760_v63 = vld [vmem:[#allocation10 + $0x70] sm:$0xff] }
 0x19d   :  { %678 = vmatpush1.msra.mxu1 %v623_v0  ;;  %900 = vmatpush3.msra.mxu0 %v761_v61  ;;  %v775_v0 = vld [vmem:[#allocation10 + $0xe8] sm:$0xff] }
 0x19e   :  { %679 = vmatprep.subr.mxu1 %v622_v1  ;;  %901 = vmatprep.subr.mxu0 %v776_v62  ;;  %v759_v1 = vld [vmem:[#allocation10 + $0x68] sm:$0xff] }
 0x19f   :  { %680 = vmatpush1.msra.mxu1 %v621_v3  ;;  %902 = vmatpush3.msra.mxu0 %v760_v63  ;;  %v774_v3 = vld [vmem:[#allocation10 + $0xe0] sm:$0xff] }
 0x1a0   :  { %681 = vmatprep.subr.mxu1 %v620_v4  ;;  %903 = vmatprep.subr.mxu0 %v775_v0  ;;  %v758_v4 = vld [vmem:[#allocation10 + $0x60] sm:$0xff] }
 0x1a1   :  { %682 = vmatpush1.msra.mxu1 %v619_v5  ;;  %904 = vmatpush3.msra.mxu0 %v759_v1  ;;  %v773_v5 = vld [vmem:[#allocation10 + $0xd8] sm:$0xff] }
 0x1a2   :  { %683 = vmatprep.subr.mxu1 %v618_v6  ;;  %905 = vmatprep.subr.mxu0 %v774_v3  ;;  %v757_v6 = vld [vmem:[#allocation10 + $0x58] sm:$0xff] }
 0x1a3   :  { %684 = vmatpush1.msra.mxu1 %v617_v7  ;;  %906 = vmatpush3.msra.mxu0 %v758_v4  ;;  %v772_v7 = vld [vmem:[#allocation10 + $0xd0] sm:$0xff] }
 0x1a4   :  { %685 = vmatprep.subr.mxu1 %v616_v8  ;;  %907 = vmatprep.subr.mxu0 %v773_v5  ;;  %v756_v8 = vld [vmem:[#allocation10 + $0x50] sm:$0xff] }
 0x1a5   :  { %686 = vmatpush1.msra.mxu1 %v615_v9  ;;  %908 = vmatpush3.msra.mxu0 %v757_v6  ;;  %v771_v9 = vld [vmem:[#allocation10 + $0xc8] sm:$0xff] }
 0x1a6   :  { %687 = vmatprep.subr.mxu1 %v614_v10  ;;  %909 = vmatprep.subr.mxu0 %v772_v7  ;;  %v755_v10 = vld [vmem:[#allocation10 + $0x48] sm:$0xff] }
 0x1a7   :  { %688 = vmatpush1.msra.mxu1 %v613_v11  ;;  %910 = vmatpush3.msra.mxu0 %v756_v8  ;;  %v770_v11 = vld [vmem:[#allocation10 + $0xc0] sm:$0xff] }
 0x1a8   :  { %689 = vmatprep.subr.mxu1 %v612_v12  ;;  %911 = vmatprep.subr.mxu0 %v771_v9  ;;  %v754_v12 = vld [vmem:[#allocation10 + $0x40] sm:$0xff] }
 0x1a9   :  { %690 = vmatpush1.msra.mxu1 %v611_v13  ;;  %912 = vmatpush3.msra.mxu0 %v755_v10  ;;  %v769_v13 = vld [vmem:[#allocation10 + $0xb8] sm:$0xff] }
 0x1aa   :  { %691 = vmatprep.subr.mxu1 %v610_v14  ;;  %913 = vmatprep.subr.mxu0 %v770_v11  ;;  %v753_v14 = vld [vmem:[#allocation10 + $0x38] sm:$0xff] }
 0x1ab   :  { %692 = vmatpush1.msra.mxu1 %v609_v15  ;;  %914 = vmatpush3.msra.mxu0 %v754_v12  ;;  %v768_v15 = vld [vmem:[#allocation10 + $0xb0] sm:$0xff] }
 0x1ac   :  { %693 = vmatprep.subr.mxu1 %v608_v16  ;;  %915 = vmatprep.subr.mxu0 %v769_v13  ;;  %v752_v16 = vld [vmem:[#allocation10 + $0x30] sm:$0xff] }
 0x1ad   :  { %694 = vmatpush1.msra.mxu1 %v607_v17  ;;  %916 = vmatpush3.msra.mxu0 %v753_v14  ;;  %v767_v17 = vld [vmem:[#allocation10 + $0xa8] sm:$0xff] }
 0x1ae   :  { %695 = vmatprep.subr.mxu1 %v606_v18  ;;  %917 = vmatprep.subr.mxu0 %v768_v15  ;;  %v751_v18 = vld [vmem:[#allocation10 + $0x28] sm:$0xff] }
 0x1af   :  { %696 = vmatpush1.msra.mxu1 %v605_v19  ;;  %918 = vmatpush3.msra.mxu0 %v752_v16  ;;  %v766_v19 = vld [vmem:[#allocation10 + $0xa0] sm:$0xff] }
 0x1b0   :  { %697 = vmatprep.subr.mxu1 %v604_v20  ;;  %919 = vmatprep.subr.mxu0 %v767_v17  ;;  %v750_v20 = vld [vmem:[#allocation10 + $0x20] sm:$0xff] }
 0x1b1   :  { %698 = vmatpush1.msra.mxu1 %v603_v21  ;;  %920 = vmatpush3.msra.mxu0 %v751_v18  ;;  %v444_v21 = vshrl.u32 %v97_v60, 7  ;;  %v765_v60 = vld [vmem:[#allocation10 + $0x98] sm:$0xff] }
 0x1b2   :  { %699 = vmatprep.subr.mxu1 %v602_v22  ;;  %921 = vmatprep.subr.mxu0 %v766_v19 }
 0x1b3   :  { %700 = vmatpush1.msra.mxu1 %v601_v23  ;;  %922 = vmatpush3.msra.mxu0 %v750_v20  ;;  %v445_v22 = vsub.s32 0, %v444_v21  ;;  %v441_v23 = vld [vmem:[%s1266_s3] sm:$0x3] }
 0x1b4   :  { %701 = vmatprep.subr.mxu1 %v600_v24  ;;  %v449_v24 = vsub.s32 1, %v444_v21  ;;  %923 = vmatprep.subr.mxu0 %v765_v60 }
 0x1b5   :  { %702 = vmatpush1.msra.mxu1 %v599_v25  ;;  %v446_v25 = vrot.slane %v441_v23, %v445_v22 }
 0x1b6   :  { %703 = vmatprep.subr.mxu1 %v598_v26  ;;  %v450_v26 = vrot.slane %v441_v23, %v449_v24 }
 0x1b7   :  { %704 = vmatpush1.msra.mxu1 %v597_v27 }
 0x1b8   :  { %705 = vmatprep.subr.mxu1 %v660_v28 }
 0x1b9   :  { %706 = vmatpush2.msra.mxu1 %v659_v29 }
 0x1ba   :  { %707 = vmatprep.subr.mxu1 %v658_v30 }
 0x1bb   :  { %708 = vmatpush2.msra.mxu1 %v657_v31 }
 0x1bc   :  { %709 = vmatprep.subr.mxu1 %v656_v32 }
 0x1bd   :  { %710 = vmatpush2.msra.mxu1 %v655_v33 }
 0x1be   :  { %711 = vmatprep.subr.mxu1 %v654_v2 }
 0x1bf   :  { %712 = vmatpush2.msra.mxu1 %v653_v34 }
 0x1c0   :  { %713 = vmatprep.subr.mxu1 %v652_v35 }
 0x1c1   :  { %714 = vmatpush2.msra.mxu1 %v651_v36  ;;  %v749_v36 = vld [vmem:[#allocation10 + $0x18] sm:$0xff] }
 0x1c2   :  { %715 = vmatprep.subr.mxu1 %v650_v37  ;;  %924 = vmatpush3.msra.mxu0 %v749_v36  ;;  %v764_v37 = vld [vmem:[#allocation10 + $0x90] sm:$0xff] }
 0x1c3   :  { %716 = vmatpush2.msra.mxu1 %v649_v38  ;;  %925 = vmatprep.subr.mxu0 %v764_v37  ;;  %v748_v38 = vld [vmem:[#allocation10 + $0x10] sm:$0xff] }
 0x1c4   :  { %717 = vmatprep.subr.mxu1 %v648_v39  ;;  %926 = vmatpush3.msra.mxu0 %v748_v38  ;;  %v763_v39 = vld [vmem:[#allocation10 + $0x88] sm:$0xff] }
 0x1c5   :  { %718 = vmatpush2.msra.mxu1 %v647_v40  ;;  %927 = vmatprep.subr.mxu0 %v763_v39  ;;  %v747_v40 = vld [vmem:[#allocation10 + $0x8] sm:$0xff] }
 0x1c6   :  { %719 = vmatprep.subr.mxu1 %v646_v41  ;;  %928 = vmatpush3.msra.mxu0 %v747_v40  ;;  %v762_v41 = vld [vmem:[#allocation10 + $0x80] sm:$0xff] }
 0x1c7   :  { %720 = vmatpush2.msra.mxu1 %v645_v42  ;;  %v746_v42 = vld [vmem:[#allocation10] sm:$0xff]  ;;  %929 = vmatprep.subr.mxu0 %v762_v41 }
 0x1c8   :  { %721 = vmatprep.subr.mxu1 %v644_v43  ;;  %930 = vmatpush3.msra.mxu0 %v746_v42  ;;  %v661_v43 = vld [vmem:[%s1268_s5] sm:$0x3]  ;;  %s1100_s5 = scalar_lea.vmem %s863_s15, 128 }
 0x1c9   :  { %722 = vmatpush2.msra.mxu1 %v643_v44  ;;  %v666_v44 = vrot.slane %v661_v43, %v445_v22  ;;  %p1101_p11 = scmp.ne.s32.totalorder %s863_s15, %s1100_s5  ;;  %p1106_p13 = scmp.lt.s32.totalorder %s1100_s5, %s1100_s5 }
 0x1ca   :  { %723 = vmatprep.subr.mxu1 %v642_v45  ;;  %v670_v45 = vrot.slane %v661_v43, %v449_v24 }
 0x1cb   :  { %724 = vmatpush2.msra.mxu1 %v641_v46  ;;  %p1107_p0 = por %p1106_p13, %p1105_p12 }
 0x1cc   :  { %725 = vmatprep.subr.mxu1 %v640_v47 }
 0x1cd   :  { %726 = vmatpush2.msra.mxu1 %v639_v48  ;;  %p1108_p1 = pnand %p1107_p0, %p1101_p11 }
 0x1ce   :  { %727 = vmatprep.subr.mxu1 %v638_v49 }
 0x1cf   :  { %728 = vmatpush2.msra.mxu1 %v637_v50 }
 0x1d0   :  { %729 = vmatprep.subr.mxu1 %v636_v51 }
 0x1d1   :  { %730 = vmatpush2.msra.mxu1 %v635_v52 }
 0x1d2   :  { %731 = vmatprep.subr.mxu1 %v634_v53  ;;  %v881_v53 = vld [vmem:[%s1270_s7] ss:$0 sm:$0xff] }
 0x1d3   :  { %732 = vmatpush2.msra.mxu1 %v633_v54 }
 0x1d4   :  { %733 = vmatprep.subr.mxu1 %v632_v55 }
 0x1d5   :  { %734 = vmatpush2.msra.mxu1 %v631_v56 }
 0x1d6   :  { %735 = vmatprep.subr.mxu1 %v630_v57 }
 0x1d7   :  { %736 = vmatpush2.msra.mxu1 %v629_v58 }
 0x258   :  { %v590_v27 = vpop.f32.mrf.mxu1 }
 0x25a   :  { %v592_v32 = vpop.f32.mrf.mxu1 }
 0x25b   :  { %v519_v28 = vpop.f32.mrf.mxu0 }
 0x25c   :  { %v520_v29 = vadd.f32 %v519_v28, %v446_v25 }
 0x25d   :  { %v521_v30 = vpop.f32.mrf.mxu0 }
 0x25e   :  { %v522_v31 = vadd.f32 %v521_v30, %v450_v26  ;;  %v591_v33 = vadd.f32 %v590_v27, %v520_v29 }
 0x260   :  { %v593_v2 = vadd.f32 %v592_v32, %v522_v31  ;;  %v595_v35 = vmax.f32 %v591_v33, 0.0 }
 0x262   :  { %v596_v34 = vmax.f32 %v593_v2, 0.0 }
 0x264   :  { %737 = vmatprep.mubr.f32.mxu1 %v596_v34 }
 0x265   :  { %738 = vmatmul.mubr.f32.vlgmr.msra.gmra.mxu1 %v595_v35 }
 0x325   :  { %v739_v46 = vpop.f32.mrf.mxu1 }
 0x326   :  { %v740_v47 = vadd.f32 %v739_v46, %v666_v44 }
 0x327   :  { %v741_v48 = vpop.f32.mrf.mxu1 }
 0x328   :  { %v742_v49 = vadd.f32 %v741_v48, %v670_v45  ;;  %v744_v51 = vmax.f32 %v740_v47, 0.0 }
 0x32a   :  { %v745_v50 = vmax.f32 %v742_v49, 0.0 }
 0x32c   :  { %849 = vmatprep.mubr.f32.mxu0 %v745_v50 }
 0x32d   :  { %850 = vmatmul.mubr.f32.vlgmr.msra.gmra.mxu0 %v744_v51 }
 0x3ed   :  { %v931_v52 = vpop.f32.mrf.mxu0 }
 0x3ef   :  { %v932_v54 = vpop.f32.mrf.mxu0 }
 0x3f0   :  { %v933_v55 = vadd.f32 %v932_v54, %v931_v52 }
 0x3f2   :  { %v852_v56 = vadd.f32 %v933_v55, %v881_v53 }
 0x3f4   :  { %855 = vst [vmem:[#allocation11] sm:$0xff] %v852_v56 }
 0x3f5   :  { %1111 = shalt.err (!%p1108_p1)
}
 0x3f6   :  { %865 = dma.vmem_to_hbm [thread:$0]  %s863_s15, 128, %s1271_s8, [#allocation4]  }
 0x3f7   :  { %1126 = dma.done.wait [#allocation4], 128  }
 0x3f8   :  { %1127 = vsyncadd [#allocation4], 4294967168 }
 0x3f9   :  { %869 = vsyncpa [#allocation3], 1 }
 0x3fa   :  { %870 = vsyncpa [#allocation6], 1 }
 0x3fb   :  { %871 = vsyncpa [#allocation9], 1 }
 0x3fc   :  { %872 = vsyncpa [#allocation4], 1 }

</bundles_post_ra>
